<compile_context>
chip_gen: v7x
topology: tpu7x:2x2x1
jax: 0.10.0
libtpu: 0.0.40
codegen_flags: <defaults>
</compile_context>

<pallas_src>
import functools

import jax
import jax.numpy as jnp
from jax import lax
from jax.experimental import pallas as pl
from jax.experimental.pallas import tpu as pltpu


_LANE = 128
_TM_CAP, _TN_CAP, _TK_CAP = 512, 1024, 1024


def _round_up(a: int, b: int) -> int:
    return -(-a // b) * b


def _cdiv(a: int, b: int) -> int:
    return -(-a // b)


def _largest_dividing_tile(padded_dim: int, unit: int, cap: int) -> int:
    """Largest multiple of `unit` <= cap that divides padded_dim (a multiple of unit).

    Note for v6e: prefer 256-multiples when they divide (its MXU is 2x256x256);
    the descending search naturally picks the largest available divisor.
    """
    t = min(cap, padded_dim)
    while t > unit and padded_dim % t:
        t -= unit
    return t


# --------------------------- kernels ---------------------------------------


def _gl_kernel_fastk(x_ref, w_ref, noise_ref, o_ref):
    """Single-K-tile fast path: 2-D grid, no accumulator scratch."""
    acc = lax.dot_general(
        x_ref[...],
        w_ref[...],
        dimension_numbers=(((1,), (1,)), ((), ())),  # contract last axes: x @ W.T
        preferred_element_type=jnp.float32,
    )
    o_ref[...] = (acc + noise_ref[...].astype(jnp.float32)).astype(o_ref.dtype)


def _gl_kernel_multik(x_ref, w_ref, noise_ref, o_ref, acc_ref):
    """3-D grid (M, N, K) with K (reduction) last; f32 accumulator in VMEM."""

    @pl.when(pl.program_id(2) == 0)
    def _():
        # Fold the per-output-neuron noise into the accumulator init so the
        # epilogue is just a cast + lane-dense store.
        acc_ref[...] = jnp.broadcast_to(
            noise_ref[...].astype(jnp.float32), acc_ref.shape
        )

    acc_ref[...] += lax.dot_general(
        x_ref[...],
        w_ref[...],
        dimension_numbers=(((1,), (1,)), ((), ())),
        preferred_element_type=jnp.float32,
    )

    @pl.when(pl.program_id(2) == pl.num_programs(2) - 1)
    def _():
        o_ref[...] = acc_ref[...].astype(o_ref.dtype)


# --------------------------- wrapper ----------------------------------------


@functools.partial(jax.jit, static_argnames=("compute_dtype",))
def gaussian_linear_2d(x2d, w, noise, compute_dtype=jnp.float32):
    """x2d: [M, in_num], w: [out_num, in_num], noise: [out_num] -> [M, out_num]."""
    M, K = x2d.shape
    N, K2 = w.shape
    assert K == K2, "in_num mismatch between x and w"
    out_dtype = x2d.dtype
    compute_dtype = jnp.dtype(compute_dtype)

    # bf16 operands hit the bf16-native MXU (197/918/996 TF/s on v5e/v6e/v7x)
    # and halve HBM traffic on x and W; accumulation + noise stay f32.
    if x2d.dtype != compute_dtype:
        x2d = x2d.astype(compute_dtype)
        w = w.astype(compute_dtype)

    sub = 16 if compute_dtype == jnp.dtype(jnp.bfloat16) else 8  # sublane pack

    # ---- K (reduction) axis: must be exactly covered -> zero-pad iff needed ----
    Kp = _round_up(K, _LANE)
    if Kp != K:
        x2d = jnp.pad(x2d, ((0, 0), (0, Kp - K)))
        w = jnp.pad(w, ((0, 0), (0, Kp - K)))
    tk = _largest_dividing_tile(Kp, _LANE, _TK_CAP)
    gk = Kp // tk

    # ---- M / N axes: no wrapper-side padding; ragged edges are masked on store ----
    tm = min(_round_up(M, sub), _TM_CAP)
    Np = _round_up(N, _LANE)
    tn = _largest_dividing_tile(Np, _LANE, _TN_CAP)
    gi = _cdiv(M, tm)
    gj = Np // tn

    # v7x has 2 TensorCores: ensure at least one "parallel" axis has >= 2 tiles.
    if gi == 1 and gj == 1:
        if tn >= 2 * _LANE and (tn // 2) % _LANE == 0 and Np % (tn // 2) == 0:
            tn //= 2
            gj = Np // tn
        elif tm > sub and M > sub:
            tm = max(sub, _round_up(tm // 2, sub))
            gi = _cdiv(M, tm)

    noise_row = noise.reshape(1, N)

    in_itemsize = compute_dtype.itemsize
    out_itemsize = jnp.dtype(out_dtype).itemsize
    cost = pl.CostEstimate(
        flops=2 * M * N * K,
        bytes_accessed=(M * Kp + N * Kp) * in_itemsize + N * 4 + M * N * out_itemsize,
        transcendentals=0,
    )

    # Double-buffered VMEM footprint of the chosen tiling (+ resident f32 acc).
    vmem_bytes = (
        2 * (tm * tk + tn * tk) * in_itemsize
        + 2 * tn * 4
        + 2 * tm * tn * out_itemsize
        + tm * tn * 4
    )
    # Explicit scoped-VMEM budget: stays inside v7x's 64 MiB physical VMEM.
    vmem_limit = min(48 << 20, max(32 << 20, 2 * vmem_bytes))

    if gk == 1:
        # ---- fast path: whole reduction resident, no scratch, no predication ----
        y = pl.pallas_call(
            _gl_kernel_fastk,
            out_shape=jax.ShapeDtypeStruct((M, N), out_dtype),
            grid_spec=pltpu.PrefetchScalarGridSpec(
                num_scalar_prefetch=0,
                grid=(gi, gj),
                in_specs=[
                    pl.BlockSpec((tm, tk), lambda i, j: (i, 0)),   # x
                    pl.BlockSpec((tn, tk), lambda i, j: (j, 0)),   # W (untransposed)
                    pl.BlockSpec((1, tn), lambda i, j: (0, j)),    # noise row
                ],
                out_specs=pl.BlockSpec((tm, tn), lambda i, j: (i, j)),
            ),
            compiler_params=pltpu.CompilerParams(
                dimension_semantics=("parallel", "parallel"),
                vmem_limit_bytes=vmem_limit,
            ),
            cost_estimate=cost,
        )(x2d, w, noise_row)
    else:
        y = pl.pallas_call(
            _gl_kernel_multik,
            out_shape=jax.ShapeDtypeStruct((M, N), out_dtype),
            grid_spec=pltpu.PrefetchScalarGridSpec(
                num_scalar_prefetch=0,
                grid=(gi, gj, gk),
                in_specs=[
                    pl.BlockSpec((tm, tk), lambda i, j, k: (i, k)),   # x
                    pl.BlockSpec((tn, tk), lambda i, j, k: (j, k)),   # W (untransposed)
                    pl.BlockSpec((1, tn), lambda i, j, k: (0, j)),    # noise row
                ],
                out_specs=pl.BlockSpec((tm, tn), lambda i, j, k: (i, j)),
                scratch_shapes=[pltpu.VMEM((tm, tn), jnp.float32)],
            ),
            compiler_params=pltpu.CompilerParams(
                dimension_semantics=("parallel", "parallel", "arbitrary"),
                vmem_limit_bytes=vmem_limit,
            ),
            cost_estimate=cost,
        )(x2d, w, noise_row)

    return y


def gaussian_linear(x, w, noise, compute_dtype=jnp.float32):
    """x: [batch, *, in_num] -> [batch, *, out_num], matching the PyTorch module.

    `noise` must be freshly sampled by the caller each forward pass
    (noise = randn(out_num) * std) to match the module's semantics.
    """
    in_num = x.shape[-1]
    out_num = w.shape[0]
    lead = x.shape[:-1]
    x2d = x.reshape(-1, in_num)
    y2d = gaussian_linear_2d(x2d, w, noise, compute_dtype=compute_dtype)
    return y2d.reshape(*lead, out_num)


# --------------------------- self-test ---------------------------------------


if __name__ == "__main__":
    def run_case(in_num, out_num, std, batch, seq, compute_dtype, atol, rtol, tag):
        key = jax.random.PRNGKey(0)
        k_w, k_x, k_n = jax.random.split(key, 3)

        # torch.rand(out_num, in_num) / 128  ->  uniform[0,1) / 128
        w = jax.random.uniform(k_w, (out_num, in_num), dtype=jnp.float32) / 128.0
        x = jax.random.normal(k_x, (batch, seq, in_num), dtype=jnp.float32)
        # noise = randn(out_num) * std (sampled once per forward, per output neuron)
        noise = jax.random.normal(k_n, (out_num,), dtype=jnp.float32) * std

        y = gaussian_linear(x, w, noise, compute_dtype=compute_dtype)
        jax.block_until_ready(y)

        y_ref = x @ w.T + noise
        assert y.shape == (batch, seq, out_num), tag
        assert jnp.allclose(y, y_ref, atol=atol, rtol=rtol), tag

    # Module config from the spec: in_num=128, out_num=128, std=0.1 (fast-K path).
    run_case(128, 128, 0.1, 2, 8, jnp.float32, 1e-5, 1e-5, "f32 fast-K")
    run_case(128, 128, 0.1, 2, 8, jnp.bfloat16, 3e-2, 3e-2, "bf16 fast-K")
    # Larger reduction dim to exercise the multi-K accumulator path.
    run_case(2048, 128, 0.1, 2, 8, jnp.float32, 5e-3, 5e-3, "f32 multi-K")
    run_case(2048, 128, 0.1, 2, 8, jnp.bfloat16, 5e-2, 5e-2, "bf16 multi-K")

    print("KERNEL_OK")
</pallas_src>

<mosaic_0001>
module attributes {stable_mosaic.version = 11 : i64} {
  func.func @_gl_kernel_fastk(%arg0: i32, %arg1: i32, %arg2: memref<8x128xf32, #tpu.memory_space<vmem>>, %arg3: memref<128x128xf32, #tpu.memory_space<vmem>>, %arg4: memref<1x128xf32, #tpu.memory_space<vmem>>, %arg5: memref<8x128xf32, #tpu.memory_space<vmem>>) attributes {dimension_semantics = [#tpu.dimension_semantics<parallel>, #tpu.dimension_semantics<parallel>], iteration_bounds = array<i64: 2, 1>, scalar_prefetch = 0 : i64, scratch_operands = 0 : i64, tpu.core_type = #tpu.core_type<tc>, window_params = [{transform_indices = @transform_0, window_bounds = array<i64: 8, 128>}, {transform_indices = @transform_1, window_bounds = array<i64: 128, 128>}, {transform_indices = @transform_2, window_bounds = array<i64: 1, 128>}, {transform_indices = @transform_3, window_bounds = array<i64: 8, 128>}]} {
    %c0 = arith.constant 0 : index
    %c0_0 = arith.constant 0 : index
    %0 = vector.load %arg2[%c0, %c0_0] : memref<8x128xf32, #tpu.memory_space<vmem>>, vector<8x128xf32>
    %c0_1 = arith.constant 0 : index
    %c0_2 = arith.constant 0 : index
    %1 = vector.load %arg3[%c0_1, %c0_2] : memref<128x128xf32, #tpu.memory_space<vmem>>, vector<128x128xf32>
    %cst = arith.constant dense<0.000000e+00> : vector<8x128xf32>
    %2 = tpu.matmul %0, %1, %cst {dimension_numbers = #tpu.dot_dimension_numbers<[1], [1], [0], [0], [0, 0, 1, 0], [], []>} : vector<8x128xf32>, vector<128x128xf32>, vector<8x128xf32> -> vector<8x128xf32>
    %c0_3 = arith.constant 0 : index
    %c0_4 = arith.constant 0 : index
    %3 = vector.load %arg4[%c0_3, %c0_4] : memref<1x128xf32, #tpu.memory_space<vmem>>, vector<1x128xf32>
    %4 = vector.broadcast %3 : vector<1x128xf32> to vector<8x128xf32>
    %5 = arith.addf %2, %4 : vector<8x128xf32>
    %c0_5 = arith.constant 0 : index
    %c0_6 = arith.constant 0 : index
    %6 = vector.load %arg5[%c0_5, %c0_6] : memref<8x128xf32, #tpu.memory_space<vmem>>, vector<8x128xf32>
    tpu.vector_store %arg5[%c0_5, %c0_6], %5 {strides = array<i32>} : memref<8x128xf32, #tpu.memory_space<vmem>>, vector<8x128xf32>,
    return
  }
  func.func @transform_0(%arg0: i32, %arg1: i32) -> (i32, i32) {
    %c0_i32 = arith.constant 0 : i32
    %c0_i32_0 = arith.constant 0 : i32
    return %arg0, %c0_i32 : i32, i32
  }
  func.func @transform_1(%arg0: i32, %arg1: i32) -> (i32, i32) {
    %c0_i32 = arith.constant 0 : i32
    %c0_i32_0 = arith.constant 0 : i32
    return %arg1, %c0_i32 : i32, i32
  }
  func.func @transform_2(%arg0: i32, %arg1: i32) -> (i32, i32) {
    %c0_i32 = arith.constant 0 : i32
    %c0_i32_0 = arith.constant 0 : i32
    return %c0_i32, %arg1 : i32, i32
  }
  func.func @transform_3(%arg0: i32, %arg1: i32) -> (i32, i32) {
    %c0_i32 = arith.constant 0 : i32
    return %arg0, %arg1 : i32, i32
  }
}

</mosaic_0001>

<bundles_post_ra>
// kernel: gaussian_linear_2d.1
= control target key start
LH: loop header
LB: loop body
LE: loop exit
PB: predicated region body
PF: predicated region fallthrough
CT: control target
= control target key end

     0   :  { %8 = vsyncpa [#allocation3], 0  ;;  %s1020_s0 = inlined_call_operand.hbm [shape: f32[16,128], index: 0, kind: input, shape index: {}]   ;;  %s1021_s1 = inlined_call_operand.hbm [shape: f32[128,128], index: 1, kind: input, shape index: {}]   ;;  %s1022_s2 = inlined_call_operand.vmem [shape: f32[1,128], index: 2, kind: input, shape index: {}]   ;;  %s1023_s3 = inlined_call_operand.hbm [shape: f32[16,128], index: 3, kind: output, shape index: {}]  }
   0x1   :  { %10 = vsyncpa [#allocation3 + $0x1], 0 }
   0x2   :  { %11 = vsyncpa [#allocation6], 0 }
   0x3   :  { %12 = vsyncpa [#allocation4], 0 }
   0x4   :  { %14 = vsyncpa [#allocation4 + $0x1], 0  ;;  %s796_s12 = smov 0   ;;  %s798_s13 = smov 0  }
   0x5   :  { %s800_s14 = smov 0   ;;  %s802_s15 = smov 0  }
   0x6   :  { %s804_s16 = smov 0   ;;  %s806_s17 = smov 0  }
   0x7 LB: > { %s451_s18 = sadd.s32 4294967295, %s766_s17   ;;  %s452_s19 = sadd.s32 4294967294, %s766_s17   ;;  %s766_s17 = sphi %s806_s17, %s20_s17   ;;  %s762_s16 = sphi %s804_s16, %s1047_s16   ;;  %s758_s15 = sphi %s802_s15, %s1046_s15   ;;  %s754_s14 = sphi %s800_s14, %s1045_s14   ;;  %s750_s13 = sphi %s798_s13, %s1044_s13   ;;  %s746_s12 = sphi %s796_s12, %s1043_s12  }
   0x8   : > { %p52_p0 = scmp.ne.s32.totalorder %s750_s13, %s746_s12  ;;  %p830_p1 = scmp.eq.s32.totalorder %s451_s18, 0 }
   0x9   : > { %p834_p2 = scmp.eq.s32.totalorder %s451_s18, 1  ;;  %p136_p3 = scmp.eq.s32.totalorder %s452_s19, 1 }
   0xa   : > { %s1028_s20 = scalar_select %p830_p1, 1, 0 }
   0xb   : > { %s1029_s21 = scalar_select %p834_p2, 1, 0 }
   0xc   : > { %p840_p4 = por %p830_p1, %p52_p0  ;;  %p453_p5 = scmp.ge.s32.totalorder %s766_s17, 1 }
   0xd   : > { %p845_p6 = por %p136_p3, %p52_p0  ;;  %p143_p7 = scmp.lt.s32.totalorder %s766_s17, 3 }
   0xe   : > { %s1030_s22 = scalar_select %p840_p4, 1, 0 }
   0xf   : > { %s1031_s23 = scalar_select %p845_p6, 1, 0 }
  0x10   : > { %p850_p8 = pnand %p453_p5, %p143_p7  ;;  %s768_s25 = smov [#allocation5]  }
  0x11   : > { %s158_s26 = sshll.u32 %s768_s25, 4  ;;  %s32_s28 = sadd.s32 1, %s762_s16  ;;  %s159_s26 = int_to_ptr.vmem [resolvable:$true] %s158_s26 }
  0x12   : > { %s1032_s24 = scalar_select %p850_p8, 1, 0 }
  0x13   : > { %p552_p9 = pneg %p850_p8  ;;  %s622_s4 = scalar_lea.hbm %s1021_s1, 2048 }
  0x14   : > { %p623_p12 = scmp.ne.s32.totalorder %s1021_s1, %s622_s4  ;;  %p629_p5 = scmp.lt.u32.totalorder %s622_s4, %s1021_s1 }
  0x15   : > { %p859_p11 = pnand %p552_p9, %p830_p1 }
  0x17   : > { %p624_p13 = pneg %p859_p11 }
  0x19   : > { %p625_p0 = pnand %p624_p13, %p623_p12 }
  0x1b   : > { %p626_p3 = pneg %p625_p0 }
  0x1d   : > { %p631_p7 = pnand %p629_p5, %p626_p3 }
  0x1f   : > { %634 = shalt.err (!%p631_p7)
}
  0x20   : > { %s635_s9 = scalar_lea.vmem %s159_s26, 2048  ;;  %p643_p1 = scmp.lt.s32.totalorder %s159_s26, %s159_s26 }
  0x21   : > { %p636_p9 = scmp.ne.s32.totalorder %s159_s26, %s635_s9  ;;  %p644_p4 = scmp.lt.s32.totalorder %s635_s9, %s635_s9 }
  0x23   : > { %p638_p10 = pnand %p636_p9, %p624_p13  ;;  %p645_p8 = por %p644_p4, %p643_p1 }
  0x25   : > { %p639_p6 = pneg %p638_p10 }
  0x27   : > { %p646_p2 = pnand %p645_p8, %p639_p6 }
  0x29   : > { %649 = shalt.err (!%p646_p2)
}
  0x2a   : > { %s769_s10 = smov 128   ;;  %s770_s11 = smov 8  }
  0x2b   : > { %555 = dma.hbm_to_vmem [thread:$0]  (!%p859_p11), %s1021_s1, 2048, %s159_s26, [#allocation6], %s769_s10, %s769_s10, %s770_s11  }
  0x2c   : > { %p34_p1 = scmp.ge.s32.totalorder %s32_s28, 2  ;;  %s39_s25 = sadd.s32 1, %s754_s14 }
  0x2d   : > { %p46_p2 = scmp.ne.s32.totalorder %s754_s14, %s750_s13  ;;  %p47_p4 = scmp.eq.s32.totalorder %s766_s17, 0 }
  0x2e   : > { %s1049_s28 = smov (%p34_p1, %s32_s28), 0  ;;  %p1035_p8 = scmp.ne.s32.totalorder %s1029_s21, 0 }
  0x2f   : > { %p886_p6 = por %p47_p4, %p46_p2  ;;  %s36_s27 = ssub.s32 %s762_s16, %s1049_s28 }
  0x30   : > { %p892_p10 = por %p1035_p8, %p46_p2  ;;  %p565_p12 = scmp.lt.s32.totalorder %s766_s17, 2 }
  0x31   : > { %p37_p11 = scmp.eq.s32.totalorder %s36_s27, 0  ;;  %s178_s26 = sand.u32 1, %s754_s14  }
  0x32   : > { %s457_s4 = sshll.u32 %s178_s26, 3  ;;  %s458_s6 = sshll.u32 %s762_s16, 7 }
  0x33   : > { %s901_s5 = scalar_select %p37_p11, %s754_s14, %s39_s25  }
  0x34   : > { %s907_s9 = scalar_lea.hbm %s1020_s0, %s458_s6  ;;  %s182_s21 = scalar_lea.vmem [#allocation2], %s457_s4 }
  0x35   : > { %s189_s10 = sshll.u32 %s182_s21, 4  ;;  %p913_p13 = pnand %p565_p12, %p886_p6  ;;  %s909_s10 = int_to_ptr.vmem [resolvable:$true] %s189_s10 }
  0x36   : > { %s179_s18 = scalar_lea.sflag [#allocation3], %s178_s26  ;;  %s650_s19 = scalar_lea.hbm %s907_s9, 128 }
  0x37   : > { %p651_p0 = scmp.ne.s32.totalorder %s907_s9, %s650_s19  ;;  %p652_p3 = pneg %p913_p13 }
  0x38   : > { %s655_s4 = scalar_lea.hbm %s1020_s0, 256  ;;  %p656_p9 = scmp.lt.u32.totalorder %s907_s9, %s1020_s0 }
  0x39   : > { %p653_p5 = pnand %p652_p3, %p651_p0  ;;  %p657_p1 = scmp.lt.u32.totalorder %s655_s4, %s650_s19 }
  0x3a   : > { %p659_p4 = scmp.lt.u32.totalorder %s650_s19, %s907_s9 }
  0x3b   : > { %p654_p7 = pneg %p653_p5  ;;  %p658_p2 = por %p657_p1, %p656_p9 }
  0x3d   : > { %p660_p6 = por %p659_p4, %p658_p2 }
  0x3f   : > { %p661_p8 = pnand %p660_p6, %p654_p7 }
  0x41   : > { %664 = shalt.err (!%p661_p8)
}
  0x42   : > { %s665_s26 = scalar_lea.vmem %s909_s10, 128  ;;  %s771_s7 = smov [#allocation2]  }
  0x43   : > { %p666_p12 = scmp.ne.s32.totalorder %s909_s10, %s665_s26  ;;  %s670_s8 = sshll.u32 %s771_s7, 4  ;;  %s671_s8 = int_to_ptr.vmem [resolvable:$false] %s670_s8 }
  0x44   : > { %s672_s21 = scalar_lea.vmem %s671_s8, 256  ;;  %p673_p5 = scmp.lt.s32.totalorder %s909_s10, %s671_s8 }
  0x45   : > { %p668_p11 = pnand %p666_p12, %p652_p3  ;;  %p674_p9 = scmp.lt.s32.totalorder %s672_s21, %s665_s26 }
  0x47   : > { %p669_p0 = pneg %p668_p11  ;;  %p675_p1 = por %p674_p9, %p673_p5 }
  0x49   : > { %p676_p2 = pnand %p675_p1, %p669_p0 }
  0x4b   : > { %679 = shalt.err (!%p676_p2)
}
  0x4c   : > { %559 = dma.hbm_to_vmem [thread:$0]  (!%p913_p13), %s907_s9, 128, %s909_s10, %s179_s18  }
  0x4d   : > { %p1038_p7 = scmp.ne.s32.totalorder %s1032_s24, 0 }
  0x4e   : > { %s945_s19 = sand.u32 (!%p1038_p7), 1, %s750_s13   ;;  %p1039_p3 = scmp.ne.s32.totalorder (!%p1038_p7), %s1030_s22, 0 }
  0x4f   : > { %198 = sbr.rel (%p1038_p7) target bundleno = 385 (0x181), region = 32  ;;  %s460_s25 = sshll.u32 (!%p1038_p7), %s945_s19, 3 }
  0x50   : > { %s201_s27 = scalar_lea.sflag (!%p1038_p7), [#allocation3], %s945_s19  ;;  %s951_s4 = scalar_lea.vmem (!%p1038_p7), [#allocation2], %s460_s25 }
  0x56   : > { %733 = dma.done.wait (%p1039_p3), %s201_s27, 128  }
  0x57   : > { %735 = vsyncadd (%p1039_p3), %s201_s27, 4294967168  ;;  %p1040_p13 = scmp.ne.s32.totalorder %s1028_s20, 0 }
  0x59   : > { %737 = dma.done.wait (%p1040_p13), [#allocation6], 2048  }
  0x5a   : > { %739 = vsyncadd (%p1040_p13), [#allocation6], 4294965248  ;;  %v772_v0 = vmov 0.0|0.0   ;;  %vm773_vm0 = vmmov 0   ;;  %v774_v1 = vmov 0.0   ;;  %v239_v2 = vld [vmem:[#allocation5] sm:$0xff] }
  0x5b   : > { %520 = vmatprep.subr.bf16.mxu0 %v772_v0  ;;  %517 = vmatprep.mubr.msk.f32.mxu0 %vm773_vm0, %v774_v1  ;;  %v240_v3 = vld [vmem:[#allocation5 + $0x8] sm:$0xff]  ;;  %v241_v5 = vld [vmem:[#allocation5 + $0x10] sm:$0xff]  ;;  %v242_v6 = vld [vmem:[#allocation5 + $0x18] sm:$0xff]  ;;  %s465_s24 = sshll.u32 %s758_s15, 7  ;;  %s233_s9 = scalar_lea.vmem [#allocation7], %s460_s25 }
  0x5c   : > { %v521_v4 = vpack.c.bf16 %v240_v3, %v239_v2  ;;  %v524_v7 = vpack.c.bf16 %v242_v6, %v241_v5  ;;  %v243_v8 = vld [vmem:[#allocation5 + $0x20] sm:$0xff]  ;;  %v244_v9 = vld [vmem:[#allocation5 + $0x28] sm:$0xff]  ;;  %v245_v11 = vld [vmem:[#allocation5 + $0x30] sm:$0xff]  ;;  %s348_s10 = sshll.u32 %s233_s9, 4  ;;  %s971_s29 = scalar_lea.hbm %s1023_s3, %s465_s24  ;;  %s973_s10 = int_to_ptr.vmem [resolvable:$true] %s348_s10 }
  0x5d   : > { %v527_v10 = vpack.c.bf16 %v244_v9, %v243_v8  ;;  %v246_v12 = vld [vmem:[#allocation5 + $0x38] sm:$0xff]  ;;  %v247_v14 = vld [vmem:[#allocation5 + $0x40] sm:$0xff]  ;;  %v248_v15 = vld [vmem:[#allocation5 + $0x48] sm:$0xff]  ;;  %s334_s6 = scalar_lea.sflag [#allocation4], %s945_s19  ;;  %s680_s26 = scalar_lea.vmem %s973_s10, 128 }
  0x5e   : > { %522 = vmatpush3.bf16.xpose.msra.mxu0 %v521_v4  ;;  %v530_v13 = vpack.c.bf16 %v246_v12, %v245_v11  ;;  %v533_v16 = vpack.c.bf16 %v248_v15, %v247_v14  ;;  %v249_v17 = vld [vmem:[#allocation5 + $0x50] sm:$0xff]  ;;  %v250_v18 = vld [vmem:[#allocation5 + $0x58] sm:$0xff]  ;;  %v251_v20 = vld [vmem:[#allocation5 + $0x60] sm:$0xff]  ;;  %p681_p4 = scmp.ne.s32.totalorder %s973_s10, %s680_s26  ;;  %s775_s15 = smov [#allocation7]  }
  0x5f   : > { %523 = vmatprep.subr.bf16.mxu0 %v772_v0  ;;  %v536_v19 = vpack.c.bf16 %v250_v18, %v249_v17  ;;  %v252_v21 = vld [vmem:[#allocation5 + $0x68] sm:$0xff]  ;;  %v253_v23 = vld [vmem:[#allocation5 + $0x70] sm:$0xff]  ;;  %v254_v24 = vld [vmem:[#allocation5 + $0x78] sm:$0xff]  ;;  %s684_s7 = sshll.u32 %s775_s15, 4  ;;  %s685_s7 = int_to_ptr.vmem [resolvable:$false] %s684_s7 }
  0x60   : > { %v539_v22 = vpack.c.bf16 %v252_v21, %v251_v20  ;;  %v542_v25 = vpack.c.bf16 %v254_v24, %v253_v23  ;;  %v238_v26 = vld [vmem:[%s951_s4] sm:$0xff]  ;;  %p682_p6 = pnand %p681_p4, %p892_p10  ;;  %s686_s8 = scalar_lea.vmem %s685_s7, 256 }
  0x61   : > { %v463_v27 = vld [vmem:[%s1022_s2] ss:$0 sm:$0xff]  ;;  %p687_p12 = scmp.lt.s32.totalorder %s973_s10, %s685_s7  ;;  %p688_p11 = scmp.lt.s32.totalorder %s686_s8, %s680_s26 }
  0x62   : > { %p683_p8 = pneg %p682_p6 }
  0x63   : > { %p689_p0 = por %p688_p11, %p687_p12 }
  0x65   : > { %p690_p5 = pnand %p689_p0, %p683_p8 }
  0x66   : > { %525 = vmatpush3.bf16.xpose.msra.mxu0 %v524_v7 }
  0x67   : > { %526 = vmatprep.subr.bf16.mxu0 %v772_v0 }
  0x6e   : > { %528 = vmatpush3.bf16.xpose.msra.mxu0 %v527_v10 }
  0x6f   : > { %529 = vmatprep.subr.bf16.mxu0 %v772_v0 }
  0x76   : > { %531 = vmatpush3.bf16.xpose.msra.mxu0 %v530_v13 }
  0x77   : > { %532 = vmatprep.subr.bf16.mxu0 %v772_v0 }
  0x7e   : > { %534 = vmatpush3.bf16.xpose.msra.mxu0 %v533_v16 }
  0x7f   : > { %535 = vmatprep.subr.bf16.mxu0 %v772_v0 }
  0x86   : > { %537 = vmatpush3.bf16.xpose.msra.mxu0 %v536_v19 }
  0x87   : > { %538 = vmatprep.subr.bf16.mxu0 %v772_v0 }
  0x8e   : > { %540 = vmatpush3.bf16.xpose.msra.mxu0 %v539_v22 }
  0x8f   : > { %541 = vmatprep.subr.bf16.mxu0 %v772_v0 }
  0x96   : > { %543 = vmatpush3.bf16.xpose.msra.mxu0 %v542_v25 }
  0x9d   : > { %518 = vmatmul.mubr.f32.vlgmr.msra.gmra.mrb[0].mxu0 %v238_v26 }
 0x170   : > { %v328_v28 = vpop.f32.mrb[0].mxu0 }
 0x171   : > { %v329_v29 = vadd.f32 %v463_v27, %v328_v28  ;;  %v519_v30 = vpop.f32.mrb[1].mxu0 }
 0x173   : > { %332 = vst [vmem:[%s233_s9] sm:$0xff] %v329_v29 }
 0x174   : > { %693 = shalt.err (!%p690_p5)
}
 0x175   : > { %s694_s21 = scalar_lea.hbm %s971_s29, 128  ;;  %s698_s27 = scalar_lea.hbm %s1023_s3, 256 }
 0x176   : > { %p695_p9 = scmp.ne.s32.totalorder %s971_s29, %s694_s21  ;;  %p699_p7 = scmp.lt.u32.totalorder %s971_s29, %s1023_s3 }
 0x177   : > { %p700_p3 = scmp.lt.u32.totalorder %s698_s27, %s694_s21  ;;  %p702_p4 = scmp.lt.u32.totalorder %s694_s21, %s971_s29 }
 0x178   : > { %p696_p1 = pnand %p695_p9, %p892_p10 }
 0x179   : > { %p701_p13 = por %p700_p3, %p699_p7 }
 0x17a   : > { %p697_p2 = pneg %p696_p1 }
 0x17b   : > { %p703_p6 = por %p702_p4, %p701_p13 }
 0x17d   : > { %p704_p8 = pnand %p703_p6, %p697_p2 }
 0x17f   : > { %707 = shalt.err (!%p704_p8)
}
 0x180   : > { %550 = dma.vmem_to_hbm [thread:$0]  (%p892_p10), %s973_s10, 128, %s971_s29, %s334_s6  }
 0x181 PF: > { %s360_s22 = sand.u32 1, %s746_s12   ;;  %p1041_p12 = scmp.ne.s32.totalorder %s1031_s23, 0 }
 0x182   : > { %p1042_p11 = scmp.ge.s32.totalorder %s766_s17, 2  ;;  %s361_s24 = scalar_lea.sflag [#allocation4], %s360_s22 }
 0x184   : > { %p561_p0 = pnand %p1042_p11, %p1041_p12 }
 0x186   : > { %741 = dma.done.wait (!%p561_p0), %s361_s24, 128  }
 0x187   : > { %743 = vsyncadd (!%p561_p0), %s361_s24, 4294967168  ;;  %s20_s17 = sadd.s32 1, %s766_s17   ;;  %s1043_s12 = smov %s750_s13 }
 0x188   : > { %p17_p5 = scmp.ge.s32.totalorder %s20_s17, 4   ;;  %s1044_s13 = smov %s754_s14 }
 0x189   : > { %s1045_s14 = smov %s901_s5  ;;  %s1046_s15 = smov %s762_s16 }
 0x18a   : > { %s1047_s16 = smov %s1049_s28  ;;  %19 = sbr.rel (!%p17_p5) target bundleno = 7 (0x7), region = 85 }
 0x191   :  { %366 = vsyncpa [#allocation3], 1 }
 0x192   :  { %368 = vsyncpa [#allocation3 + $0x1], 1 }
 0x193   :  { %369 = vsyncpa [#allocation6], 1 }
 0x194   :  { %370 = vsyncpa [#allocation4], 1 }
 0x195   :  { %372 = vsyncpa [#allocation4 + $0x1], 1 }

</bundles_post_ra>
